<compile_context>
chip_gen: v7x
topology: tpu7x:2x2x1
jax: 0.10.0
libtpu: 0.0.40
codegen_flags: <defaults>
</compile_context>

<pallas_src>
import functools

import numpy as np
import jax
import jax.numpy as jnp
from jax.experimental import pallas as pl
from jax.experimental.pallas import tpu as pltpu

LANES = 128          # every matmul operand is a multiple of 128 lanes wide
NP = 16              # batch rows per grid step (perf-review sweet spot)

# small CIFAR-CNN configuration (3 conv+pool blocks, 2 FC layers, 10 classes)
C_IN, C1, C2, C3 = 3, 8, 16, 32
H0 = W0 = 16
H1, H2 = H0 // 2, H0 // 4          # 8, 4
FC_HIDDEN = 64
NUM_CLASSES = 10

# slots inside the packed (12, 128, 128) bf16 weight tensor
M_CONV1, M_CONV2, M_CONV3 = 0, 3, 6      # 3 stacked row-tap slots per conv (K=384)
M_FC1, M_FC2 = 9, 11                     # 2 stacked slots for fc1 (K=256), 1 for fc2
N_MATS = 12
# rows inside the packed (8, 128) f32 bias tensor
B_CONV1, B_CONV2, B_CONV3, B_FC1, B_FC2 = 0, 1, 2, 3, 4
N_BIAS_ROWS = 8
# lanes of the single packed output tile
LOSS_LANE, PRED_LANE = 16, 17            # lanes [0, 10) hold the logits


def _cdiv(a, b):
    return (a + b - 1) // b


# ----------------------------------------------------------------------------
# Fused forward kernel
# ----------------------------------------------------------------------------
def _fused_cnn_kernel(x_ref, tgt_ref, mats_ref, bias_ref, out_ref, x2_ref, x3_ref):
    f32, bf16 = jnp.float32, jnp.bfloat16

    def conv_pool(slab, h, m0, bias_row, c_out):
        """3x3 conv (+bias, ReLU) then 2x2 max-pool; width folded into lanes.

        The three row taps are fused into one K=384 MXU matmul (single weight
        push / drain instead of 3 matmuls + 2 VPU adds).  Column-pair pooling is
        a lane rotate (XLU) + max (VPU); the lane compaction that used to be two
        selection matmuls is folded into the *next* layer's host-packed weights.
        """
        op = jnp.concatenate([slab(0), slab(1), slab(2)], axis=-1)       # (h*NP, 384) bf16
        tap = mats_ref[m0:m0 + 3].reshape(3 * LANES, LANES)              # (384, 128) bf16
        acc = jnp.dot(op, tap, preferred_element_type=f32)
        acc = jnp.maximum(acc + bias_ref[bias_row:bias_row + 1, :], 0.0)
        # pool image-row pairs (rows are leading-dim blocks of NP batch lanes)
        acc = acc.reshape(h // 2, 2, NP, LANES).max(axis=1)
        acc = acc.reshape((h // 2) * NP, LANES)
        # pool column pairs: the partner column is c_out lanes away
        paired = pltpu.roll(acc, LANES - c_out, axis=1)
        return jnp.maximum(acc, paired)   # valid pooled value in one lane per pair

    zrow = jnp.zeros((1, NP, LANES), bf16)

    # ---- layer 1: 16x16x3 -> conv/relu/pool -> 8x8x8 (expanded lanes) ----
    p1 = conv_pool(lambda di: x_ref[0, di:di + H0].reshape(H0 * NP, LANES),
                   H0, M_CONV1, B_CONV1, C1)
    x2_ref[0:1] = zrow
    x2_ref[H1 + 1:H1 + 2] = zrow
    x2_ref[1:H1 + 1] = p1.reshape(H1, NP, LANES).astype(bf16)

    # ---- layer 2: 8x8x8 -> 4x4x16 ----
    p2 = conv_pool(lambda di: x2_ref[di:di + H1].reshape(H1 * NP, LANES),
                   H1, M_CONV2, B_CONV2, C2)
    x3_ref[0:1] = zrow
    x3_ref[H2 + 1:H2 + 2] = zrow
    x3_ref[1:H2 + 1] = p2.reshape(H2, NP, LANES).astype(bf16)

    # ---- layer 3: 4x4x16 -> 2x2x32 ----
    p3 = conv_pool(lambda di: x3_ref[di:di + H2].reshape(H2 * NP, LANES),
                   H2, M_CONV3, B_CONV3, C3)

    # ---- classifier head (flatten + last pool compaction folded into FC1) ----
    p3b = p3.astype(bf16).reshape(2, NP, LANES)
    fc1_op = jnp.concatenate([p3b[0], p3b[1]], axis=-1)                  # (NP, 256) bf16
    fc1_mat = mats_ref[M_FC1:M_FC1 + 2].reshape(2 * LANES, LANES)
    z = jnp.dot(fc1_op, fc1_mat, preferred_element_type=f32)
    z = jnp.maximum(z + bias_ref[B_FC1:B_FC1 + 1, :], 0.0)
    # TODO(synk): Dropout(p=0.5) from the PyTorch train-mode model is stateful
    # RNG; treated as identity (eval mode) here.
    logits = jnp.dot(z.astype(bf16), mats_ref[M_FC2], preferred_element_type=f32)
    logits = logits + bias_ref[B_FC2:B_FC2 + 1, :]                       # lanes [0,10) valid

    # ---- cross-entropy (per row) + argmax, packed into ONE lane-dense store ----
    lane = jax.lax.broadcasted_iota(jnp.int32, (NP, LANES), 1)
    valid = lane < NUM_CLASSES
    lg = jnp.where(valid, logits, jnp.float32(-1e30))
    row_max = jnp.max(lg, axis=-1, keepdims=True)
    ex = jnp.where(valid, jnp.exp(lg - row_max), 0.0)
    lse = jnp.log(jnp.sum(ex, axis=-1, keepdims=True)) + row_max
    tgt = tgt_ref[0]                                                     # (NP, 1) int32
    picked = jnp.sum(jnp.where(lane == tgt, logits, 0.0), axis=-1, keepdims=True)
    row_loss = lse - picked                                              # (NP, 1) f32

    idx = jnp.where(lg == row_max, lane.astype(f32), jnp.float32(LANES))
    preds = jnp.min(idx, axis=-1, keepdims=True)                         # (NP, 1) f32

    packed = jnp.where(valid, logits, 0.0)
    packed = jnp.where(lane == LOSS_LANE, row_loss, packed)
    packed = jnp.where(lane == PRED_LANE, preds, packed)
    out_ref[0] = packed                                                  # one 128-lane store


# ----------------------------------------------------------------------------
# Host-side packing (done once per parameter set, outside the step)
# ----------------------------------------------------------------------------
@functools.lru_cache(maxsize=None)
def _roll_pools_to_low_lane():
    """Probe pltpu.roll's rotate direction once, so the host-side weight folding
    selects the lane (low or high column of each pooled pair) that the kernel's
    roll+max actually leaves the valid pooled value in."""
    c = C1

    def k(x_ref, o_ref):
        o_ref[...] = pltpu.roll(x_ref[...], LANES - c, axis=1)

    x = jnp.tile(jnp.arange(LANES, dtype=jnp.float32)[None, :], (8, 1))
    y = pl.pallas_call(k, out_shape=jax.ShapeDtypeStruct((8, LANES), jnp.float32))(x)
    return bool(np.asarray(y)[0, 0] == float(c))


def pack_weights(params):
    """Fold conv row taps (stacked K=384), 2x2-pool lane compaction, flatten
    order and channel padding into bf16 MXU operands and 128-lane bias rows."""

    def conv_taps(w_oihw, width):
        cout, cin = w_oihw.shape[:2]
        w = np.asarray(w_oihw, np.float32)
        m = np.zeros((3, LANES, LANES), np.float32)
        for di in range(3):
            for wo in range(width):
                for dj in range(3):
                    wi = wo + dj - 1
                    if 0 <= wi < width:
                        m[di, wi * cin:(wi + 1) * cin,
                             wo * cout:(wo + 1) * cout] = w[:, :, di, dj].T
        return m

    def pair_selector(width, chans, low):
        """Expanded pooled lanes -> compacted next-layer lanes.  After roll+max
        the pooled value of output column w2 sits in the low (2*w2) or high
        (2*w2+1) column's lanes depending on the rotate direction."""
        s = np.zeros((LANES, LANES), np.float32)
        src = 0 if low else 1
        for w2 in range(width // 2):
            for c in range(chans):
                s[(2 * w2 + src) * chans + c, w2 * chans + c] = 1.0
        return s

    def fc1_mats(wfc1):
        w = np.asarray(wfc1, np.float32)                # (64, 128), torch (out, c*4+h*2+w)
        m = np.zeros((2, LANES, LANES), np.float32)
        for h in range(2):
            for w2 in range(2):
                cols = np.arange(C3) * 4 + h * 2 + w2
                m[h, w2 * C3:(w2 + 1) * C3, :FC_HIDDEN] = w[:, cols].T
        return m

    def fc2_mat(wfc2):
        w = np.asarray(wfc2, np.float32)                # (10, 64)
        m = np.zeros((LANES, LANES), np.float32)
        m[:FC_HIDDEN, :NUM_CLASSES] = w.T
        return m

    low = _roll_pools_to_low_lane()
    t1 = conv_taps(params["w1"], W0)
    t2 = conv_taps(params["w2"], W0 // 2)               # over compacted layer-2 lanes
    t3 = conv_taps(params["w3"], W0 // 4)
    f1 = fc1_mats(params["wfc1"])
    s1 = pair_selector(W0, C1, low)
    s2 = pair_selector(W0 // 2, C2, low)
    s3 = pair_selector(W0 // 4, C3, low)

    mats = np.zeros((N_MATS, LANES, LANES), np.float32)
    mats[M_CONV1:M_CONV1 + 3] = t1
    mats[M_CONV2:M_CONV2 + 3] = np.einsum("ij,djk->dik", s1, t2)   # pool fold (0/1, exact)
    mats[M_CONV3:M_CONV3 + 3] = np.einsum("ij,djk->dik", s2, t3)
    mats[M_FC1:M_FC1 + 2] = np.einsum("ij,djk->dik", s3, f1)
    mats[M_FC2] = fc2_mat(params["wfc2"])

    biases = np.zeros((N_BIAS_ROWS, LANES), np.float32)
    biases[B_CONV1] = np.tile(np.asarray(params["b1"], np.float32), W0)
    biases[B_CONV2] = np.tile(np.asarray(params["b2"], np.float32), W0 // 2)
    biases[B_CONV3] = np.tile(np.asarray(params["b3"], np.float32), W0 // 4)
    biases[B_FC1, :FC_HIDDEN] = np.asarray(params["bfc1"], np.float32)
    biases[B_FC2, :NUM_CLASSES] = np.asarray(params["bfc2"], np.float32)

    return {"mats": jnp.asarray(mats, jnp.bfloat16),
            "biases": jnp.asarray(biases, jnp.float32)}


def _prep_inputs(x_nchw, target):
    # Single small XLA repack (bf16 cast folded in, so it is one half-width copy);
    # lanes hold (width, channel), rows padded by 1 top/bottom, batch to NP*g.
    n, c, h, w = x_nchw.shape
    g = _cdiv(n, NP)
    xl = jnp.transpose(x_nchw, (0, 2, 3, 1)).reshape(n, h, w * c).astype(jnp.bfloat16)
    xl = jnp.pad(xl, ((0, g * NP - n), (1, 1), (0, LANES - w * c)))
    xl = xl.reshape(g, NP, h + 2, LANES).transpose(0, 2, 1, 3)          # (G, H+2, NP, 128)
    tgt = jnp.pad(target.astype(jnp.int32), (0, g * NP - n)).reshape(g, NP, 1)
    return xl, tgt


# ----------------------------------------------------------------------------
# ModelWithLoss forward (returns loss, argmax preds, logits)
# ----------------------------------------------------------------------------
def model_with_loss_forward(packed, x_nchw, target):
    n = x_nchw.shape[0]
    g = _cdiv(n, NP)
    xg, tgt = _prep_inputs(x_nchw, target)

    grid_spec = pltpu.PrefetchScalarGridSpec(
        num_scalar_prefetch=0,
        grid=(g,),
        in_specs=[
            pl.BlockSpec((1, H0 + 2, NP, LANES), lambda i: (i, 0, 0, 0)),  # bf16 images
            pl.BlockSpec((1, NP, 1), lambda i: (i, 0, 0)),                 # int32 targets
            # constant block index -> weights DMA'd once, not per grid step
            pl.BlockSpec((N_MATS, LANES, LANES), lambda i: (0, 0, 0)),
            pl.BlockSpec((N_BIAS_ROWS, LANES), lambda i: (0, 0)),
        ],
        out_specs=pl.BlockSpec((1, NP, LANES), lambda i: (i, 0, 0)),       # one lane-dense tile
        scratch_shapes=[
            pltpu.VMEM((H1 + 2, NP, LANES), jnp.bfloat16),   # padded layer-2 input
            pltpu.VMEM((H2 + 2, NP, LANES), jnp.bfloat16),   # padded layer-3 input
        ],
    )
    out = pl.pallas_call(
        _fused_cnn_kernel,
        out_shape=jax.ShapeDtypeStruct((g, NP, LANES), jnp.float32),
        grid_spec=grid_spec,
        compiler_params=pltpu.CompilerParams(
            dimension_semantics=("parallel",)),
    )(xg, tgt, packed["mats"], packed["biases"])

    out = out.reshape(g * NP, LANES)
    logits = out[:n, :NUM_CLASSES]
    loss = jnp.mean(out[:n, LOSS_LANE])                 # CE mean done on host: no baked N
    preds = out[:n, PRED_LANE].astype(jnp.int32)        # torch argmax is int64; int32 here
    return loss, preds, logits


# ----------------------------------------------------------------------------
# Pure-JAX reference (same bf16-input / f32-accumulate matmul numerics)
# ----------------------------------------------------------------------------
def _im2col_3x3(x_nhwc):
    n, h, w, c = x_nhwc.shape
    xp = jnp.pad(x_nhwc, ((0, 0), (1, 1), (1, 1), (0, 0)))
    patches = [xp[:, di:di + h, dj:dj + w, :] for di in range(3) for dj in range(3)]
    return jnp.stack(patches, axis=3).reshape(n * h * w, 9 * c)


def ref_forward(params, x_nchw, target):
    def mm(a, b):
        return jnp.dot(a.astype(jnp.bfloat16), b.astype(jnp.bfloat16),
                       preferred_element_type=jnp.float32)

    def conv(x, w, b):
        n, h, wd, cin = x.shape
        a = _im2col_3x3(x)
        wm = jnp.transpose(w, (2, 3, 1, 0)).reshape(9 * cin, -1)
        return jnp.maximum(mm(a, wm) + b, 0.0).reshape(n, h, wd, -1)

    def pool(x):
        n, h, w, c = x.shape
        return x.reshape(n, h // 2, 2, w // 2, 2, c).max(axis=(2, 4))

    x = jnp.transpose(x_nchw, (0, 2, 3, 1))
    x = pool(conv(x, params["w1"], params["b1"]))
    x = pool(conv(x, params["w2"], params["b2"]))
    x = pool(conv(x, params["w3"], params["b3"]))
    n = x.shape[0]
    xf = jnp.transpose(x, (0, 3, 1, 2)).reshape(n, -1)           # torch flatten order
    h1 = jnp.maximum(mm(xf, params["wfc1"].T) + params["bfc1"], 0.0)
    logits = mm(h1, params["wfc2"].T) + params["bfc2"]
    lse = jax.scipy.special.logsumexp(logits, axis=-1)
    picked = jnp.take_along_axis(logits, target[:, None].astype(jnp.int32), axis=-1)[:, 0]
    loss = jnp.mean(lse - picked)
    preds = jnp.argmax(logits, axis=-1).astype(jnp.int32)
    return loss, preds, logits


# ----------------------------------------------------------------------------
def init_params(key):
    ks = jax.random.split(key, 10)
    s = 0.1
    return {
        # conv weights in PyTorch (C_out, C_in, KH, KW) layout
        "w1": s * jax.random.normal(ks[0], (C1, C_IN, 3, 3), jnp.float32),
        "b1": s * jax.random.normal(ks[1], (C1,), jnp.float32),
        "w2": s * jax.random.normal(ks[2], (C2, C1, 3, 3), jnp.float32),
        "b2": s * jax.random.normal(ks[3], (C2,), jnp.float32),
        "w3": s * jax.random.normal(ks[4], (C3, C2, 3, 3), jnp.float32),
        "b3": s * jax.random.normal(ks[5], (C3,), jnp.float32),
        # linear weights in PyTorch (out_features, in_features) layout
        "wfc1": s * jax.random.normal(ks[6], (FC_HIDDEN, C3 * 2 * 2), jnp.float32),
        "bfc1": s * jax.random.normal(ks[7], (FC_HIDDEN,), jnp.float32),
        "wfc2": s * jax.random.normal(ks[8], (NUM_CLASSES, FC_HIDDEN), jnp.float32),
        "bfc2": s * jax.random.normal(ks[9], (NUM_CLASSES,), jnp.float32),
    }


if __name__ == "__main__":
    key = jax.random.PRNGKey(0)
    kx, kt, kp = jax.random.split(key, 3)

    N = 2
    x = jax.random.normal(kx, (N, C_IN, H0, W0), jnp.float32)        # NCHW input
    target = jax.random.randint(kt, (N,), 0, NUM_CLASSES, jnp.int32)
    params = init_params(kp)

    packed = pack_weights(params)                                    # once per params
    fwd = jax.jit(model_with_loss_forward)
    loss, preds, logits = fwd(packed, x, target)
    jax.block_until_ready((loss, preds, logits))

    # correctness check against a pure-JAX reference with matching matmul numerics
    rloss, rpreds, rlogits = jax.jit(ref_forward)(params, x, target)
    jax.block_until_ready((rloss, rpreds, rlogits))
    assert jnp.allclose(logits, rlogits, atol=3e-3, rtol=3e-3), "logits mismatch"
    assert jnp.allclose(loss, rloss, atol=3e-3, rtol=3e-3), "loss mismatch"
    # argmax must match wherever the reference top-2 margin is not vanishingly small
    srt = jnp.sort(rlogits, axis=-1)
    margin = srt[:, -1] - srt[:, -2]
    assert bool(jnp.all((preds == rpreds) | (margin < 1e-3))), "argmax mismatch"

    print("KERNEL_OK")
</pallas_src>

<mosaic_0001>
module attributes {stable_mosaic.version = 11 : i64} {
  func.func @k(%arg0: memref<8x128xf32, #tpu.memory_space<vmem>>, %arg1: memref<8x128xf32, #tpu.memory_space<vmem>>) attributes {dimension_semantics = [], scalar_prefetch = 0 : i64, scratch_operands = 0 : i64, tpu.core_type = #tpu.core_type<tc>} {
    %c0 = arith.constant 0 : index
    %c0_0 = arith.constant 0 : index
    %0 = vector.load %arg0[%c0, %c0_0] : memref<8x128xf32, #tpu.memory_space<vmem>>, vector<8x128xf32>
    %c120_i32 = arith.constant 120 : i32
    %1 = tpu.dynamic_rotate %0 by %c120_i32 dim 1 : vector<8x128xf32>, i32 -> vector<8x128xf32>
    %c0_1 = arith.constant 0 : index
    %c0_2 = arith.constant 0 : index
    %2 = vector.load %arg1[%c0_1, %c0_2] : memref<8x128xf32, #tpu.memory_space<vmem>>, vector<8x128xf32>
    tpu.vector_store %arg1[%c0_1, %c0_2], %1 {strides = array<i32>} : memref<8x128xf32, #tpu.memory_space<vmem>>, vector<8x128xf32>,
    return
  }
}

</mosaic_0001>

<bundles_post_ra>
// kernel: tpu_custom_call.1
= control target key start
LH: loop header
LB: loop body
LE: loop exit
PB: predicated region body
PF: predicated region fallthrough
CT: control target
= control target key end

     0   :  { %6 = vsyncpa [#allocation3], 0  ;;  %s128_s0 = inlined_call_operand.hbm [shape: f32[8,128], index: 0, kind: input, shape index: {}]   ;;  %s129_s1 = inlined_call_operand.hbm [shape: f32[8,128], index: 1, kind: output, shape index: {}]  }
   0x1   :  { %7 = vsyncpa [#allocation4], 0  ;;  %s91_s6 = smov [#allocation2]   ;;  %s43_s10 = scalar_lea.hbm %s128_s0, 128 }
   0x2   :  { %s14_s7 = sshll.u32 %s91_s6, 4  ;;  %p44_p0 = scmp.ne.s32.totalorder %s128_s0, %s43_s10  ;;  %s15_s7 = int_to_ptr.vmem [resolvable:$true] %s14_s7 }
   0x3   :  { %p47_p1 = scmp.lt.u32.totalorder %s43_s10, %s128_s0 }
   0x5   :  { %p49_p2 = pnand %p47_p1, %p44_p0 }
   0x7   :  { %52 = shalt.err (!%p49_p2)
}
   0x8   :  { %s53_s15 = scalar_lea.vmem %s15_s7, 128  ;;  %p58_p4 = scmp.lt.s32.totalorder %s15_s7, %s15_s7 }
   0x9   :  { %p54_p3 = scmp.ne.s32.totalorder %s15_s7, %s53_s15  ;;  %p59_p5 = scmp.lt.s32.totalorder %s53_s15, %s53_s15 }
   0xb   :  { %p60_p6 = por %p59_p5, %p58_p4 }
   0xd   :  { %p61_p7 = pnand %p60_p6, %p54_p3 }
   0xf   :  { %64 = shalt.err (!%p61_p7)
}
  0x10   :  { %17 = dma.hbm_to_vmem [thread:$0]  %s128_s0, 128, %s15_s7, [#allocation3]  }
  0x11   :  { %87 = dma.done.wait [#allocation3], 128  }
  0x12   :  { %88 = vsyncadd [#allocation3], 4294967168  ;;  %v21_v0 = vld [vmem:[#allocation2] sm:$0xff]  ;;  %s92_s18 = smov 120   ;;  %s93_s19 = smov [#allocation5]  }
  0x13   :  { %22 = vrot.lane.b32.xlu0 %v21_v0, %s92_s18  ;;  %s31_s20 = sshll.u32 %s93_s19, 4  ;;  %s32_s20 = int_to_ptr.vmem [resolvable:$true] %s31_s20 }
  0x14   :  { %s65_s21 = scalar_lea.vmem %s32_s20, 128  ;;  %p70_p9 = scmp.lt.s32.totalorder %s32_s20, %s32_s20 }
  0x15   :  { %p66_p8 = scmp.ne.s32.totalorder %s32_s20, %s65_s21  ;;  %p71_p10 = scmp.lt.s32.totalorder %s65_s21, %s65_s21 }
  0x17   :  { %p72_p11 = por %p71_p10, %p70_p9 }
  0x19   :  { %p73_p12 = pnand %p72_p11, %p66_p8 }
  0x85   :  { %v23_v1 = vpop.permute.xlu0 %22 }
  0x86   :  { %24 = vst [vmem:[#allocation5] sm:$0xff] %v23_v1 }
  0x87   :  { %76 = shalt.err (!%p73_p12)
}
  0x88   :  { %s77_s0 = scalar_lea.hbm %s129_s1, 128 }
  0x89   :  { %p78_p13 = scmp.ne.s32.totalorder %s129_s1, %s77_s0  ;;  %p81_p0 = scmp.lt.u32.totalorder %s77_s0, %s129_s1 }
  0x8b   :  { %p83_p1 = pnand %p81_p0, %p78_p13 }
  0x8d   :  { %86 = shalt.err (!%p83_p1)
}
  0x8e   :  { %34 = dma.vmem_to_hbm [thread:$0]  %s32_s20, 128, %s129_s1, [#allocation4]  }
  0x8f   :  { %89 = dma.done.wait [#allocation4], 128  }
  0x90   :  { %90 = vsyncadd [#allocation4], 4294967168 }
  0x91   :  { %38 = vsyncpa [#allocation3], 1 }
  0x92   :  { %39 = vsyncpa [#allocation4], 1 }

</bundles_post_ra>
